<compile_context>
chip_gen: v6e
topology: v6e:2x2x1
jax: 0.10.0
libtpu: 0.0.40
codegen_flags: <defaults>
</compile_context>

<pallas_src>
import jax
import jax.numpy as jnp
from jax.experimental import pallas as pl
from jax.experimental.pallas import tpu as pltpu


def _round_up(x, m):
    return ((x + m - 1) // m) * m


def _buf_bytes(rows, cols, dtype):
    """VMEM bytes of one buffer holding a (rows, cols) block of `dtype`
    (last dim padded to 128 lanes, second-minor to the native sublane tile)."""
    it = jnp.dtype(dtype).itemsize
    sub = max(8, 32 // it)           # 8 for f32, 16 for bf16, 32 for int8
    return _round_up(max(rows, 1), sub) * _round_up(max(cols, 1), 128) * it


# ----------------------- kernel A (fallback order): xW = x @ W ---------------
def _xw_kernel(x_ref, w_ref, o_ref):
    o_ref[...] = jnp.dot(
        x_ref[...], w_ref[...], preferred_element_type=jnp.float32
    ).astype(o_ref.dtype)


def _matmul_xw(x_p, w_p, *, row_tile, cd):
    """Tiled x @ W (only used when source_dim >= padded target_dim)."""
    ns_pad, sd = x_p.shape
    dp = w_p.shape[1]
    cdb = jnp.dtype(cd).itemsize

    # Guard block footprints (matters for large dims on v7x's 64 MiB VMEM).
    tr = row_tile
    while tr % 256 == 0 and _buf_bytes(tr, sd, cd) > (8 << 20):
        tr //= 2
    tn = dp
    while tn % 256 == 0 and _buf_bytes(sd, tn, cd) > (8 << 20):
        tn //= 2

    est = 2 * (_buf_bytes(tr, sd, cd) + _buf_bytes(sd, tn, cd)
               + _buf_bytes(tr, tn, cd))
    return pl.pallas_call(
        _xw_kernel,
        out_shape=jax.ShapeDtypeStruct((ns_pad, dp), cd),
        grid=(ns_pad // tr, dp // tn),
        in_specs=[pl.BlockSpec((tr, sd), lambda i, j: (i, 0)),
                  pl.BlockSpec((sd, tn), lambda i, j: (0, j))],
        out_specs=pl.BlockSpec((tr, tn), lambda i, j: (i, j)),
        compiler_params=pltpu.CompilerParams(
            dimension_semantics=("parallel", "parallel"),
            vmem_limit_bytes=int(max(est + (4 << 20), 32 << 20))),
        cost_estimate=pl.CostEstimate(
            flops=2 * ns_pad * sd * dp,
            transcendentals=0,
            bytes_accessed=(ns_pad * sd + sd * dp + ns_pad * dp) * cdb),
    )(x_p, w_p)


# ------------- kernel B: out = relu(dinv * ((adj @ feat) [@ W]) + b) ---------
def _make_agg_kernel(*, num_k, tk, x_resident, apply_w, mm_dtype):
    """Ref order: adj, feat, [w], dinv, bias, out, [acc]."""

    def kernel(*refs):
        if apply_w:
            adj_ref, feat_ref, w_ref, dinv_ref, b_ref, out_ref, *scratch = refs
        else:
            adj_ref, feat_ref, dinv_ref, b_ref, out_ref, *scratch = refs
            w_ref = None
        acc_ref = scratch[0] if num_k > 1 else None

        k = pl.program_id(1)

        if x_resident and num_k > 1:
            # Feature operand is fully resident; slice the current k chunk.
            off = pl.multiple_of(k * tk, tk)
            feat = feat_ref[pl.ds(off, tk), :]
        else:
            feat = feat_ref[...]

        # Adjacency is narrow-storage (e.g. int8); upcast before the MXU dot.
        part = jnp.dot(adj_ref[...].astype(mm_dtype), feat,
                       preferred_element_type=jnp.float32)

        def _finalize(acc):
            if apply_w:
                h = jnp.dot(acc, w_ref[...].astype(jnp.float32),
                            preferred_element_type=jnp.float32)
            else:
                h = acc
            h = h * dinv_ref[...] + b_ref[...]
            out_ref[...] = jnp.maximum(h, 0.0).astype(out_ref.dtype)

        if num_k == 1:
            # Single reduction tile: no accumulator RMW pass at all.
            _finalize(part)
        else:
            @pl.when(k == 0)
            def _():
                acc_ref[...] = jnp.zeros_like(acc_ref)

            acc_ref[...] += part

            @pl.when(k == num_k - 1)
            def _():
                _finalize(acc_ref[...])

    return kernel


def inter_graph_forward(x, inter_edge_index, weight, bias, target_feat,
                        n_target, *,
                        compute_dtype=jnp.bfloat16,
                        adj_dtype=jnp.int8,
                        tm_max=1024, tk_max=4096,
                        feat_resident_max_bytes=6 * 1024 * 1024):
    """interGraph.forward.

    compute_dtype: MXU operand dtype for x / W (bf16 recommended on v6e/v7x;
        accumulation is always f32).
    adj_dtype: adjacency *storage* dtype (upcast in-kernel).  int8 is exact
        for edge multiplicities <= 127, bfloat16 for <= 256, float32 always.
    """
    n_source, source_dim = x.shape
    assert weight.shape[0] == source_dim
    target_dim = weight.shape[1]

    cd = jnp.dtype(compute_dtype)
    ad = jnp.dtype(adj_dtype)
    cdb = cd.itemsize
    adb = ad.itemsize

    dp = _round_up(target_dim, 128)              # output lanes / MXU N width

    # ---- tile selection -----------------------------------------------------
    # Target (row) tiles: >= 2 tiles whenever possible so the "parallel" axis
    # spans both v7x TensorCores; rows aligned to the adjacency native sublane
    # tile (32 for int8, 16 for bf16, 8 for f32).
    row_align = max(8, 32 // adb)
    min_tiles = 2 if n_target > row_align else 1
    nt_tiles = max(-(-n_target // tm_max), min_tiles)
    tm = _round_up(-(-n_target // nt_tiles), row_align)
    nt_pad = nt_tiles * tm

    # Source (reduction) tiles: 128-lane aligned, minimal zero padding.
    ns128 = _round_up(n_source, 128)
    nk = max(-(-ns128 // tk_max), 1)
    tk = _round_up(-(-n_source // nk), 128)
    ns_pad = nk * tk

    # ---- operands (built directly in padded / narrow form: one HBM pass) ----
    src = inter_edge_index[0]
    tgt = inter_edge_index[1]
    adj_p = jnp.zeros((nt_pad, ns_pad), ad).at[tgt, src].add(
        jnp.ones(src.shape, ad))
    deg = jnp.zeros((n_target,), jnp.float32).at[tgt].add(1.0) + 1.0  # +self loop
    dinv_p = jnp.ones((nt_pad, 1), jnp.float32).at[:n_target, 0].set(
        jax.lax.rsqrt(deg))
    b_p = jnp.zeros((1, dp), jnp.float32).at[0, :target_dim].set(
        bias.astype(jnp.float32))
    x_p = jnp.zeros((ns_pad, source_dim), cd).at[:n_source].set(x.astype(cd))

    # ---- choose matmul order ------------------------------------------------
    # dinv*(adj@(x@W)) == dinv*((adj@x)@W); reassociate when it streams fewer
    # bytes (source_dim < padded target_dim), applying W in the epilogue.
    apply_w = source_dim < dp
    if apply_w:
        feat_p = x_p
        fd = source_dim
        w_p = jnp.zeros((source_dim, dp), jnp.float32).at[:, :target_dim].set(
            weight.astype(jnp.float32))
    else:
        w_cd = jnp.zeros((source_dim, dp), cd).at[:, :target_dim].set(
            weight.astype(cd))
        feat_p = _matmul_xw(x_p, w_cd, row_tile=tk, cd=cd)
        fd = dp
        w_p = None

    # Hold the feature operand resident in VMEM when it fits -> it is fetched
    # once instead of once per target tile.
    x_resident = _buf_bytes(ns_pad, fd, cd) <= feat_resident_max_bytes

    # ---- specs / scratch ----------------------------------------------------
    if x_resident:
        feat_spec = pl.BlockSpec((ns_pad, fd), lambda i, k: (0, 0))
    else:
        feat_spec = pl.BlockSpec((tk, fd), lambda i, k: (k, 0))

    in_specs = [pl.BlockSpec((tm, tk), lambda i, k: (i, k)), feat_spec]
    inputs = [adj_p, feat_p]
    if apply_w:
        in_specs.append(pl.BlockSpec((source_dim, dp), lambda i, k: (0, 0)))
        inputs.append(w_p)
    in_specs += [pl.BlockSpec((tm, 1), lambda i, k: (i, 0)),
                 pl.BlockSpec((1, dp), lambda i, k: (0, 0))]
    inputs += [dinv_p, b_p]

    scratch = [pltpu.VMEM((tm, fd), jnp.float32)] if nk > 1 else []

    # ---- derived VMEM limit (double-buffered blocks + accumulator + cast) ---
    est = (2 * _buf_bytes(tm, tk, ad)
           + _buf_bytes(tm, tk, cd)                      # in-kernel upcast copy
           + 2 * (_buf_bytes(ns_pad, fd, cd) if x_resident
                  else _buf_bytes(tk, fd, cd))
           + (2 * _buf_bytes(source_dim, dp, jnp.float32) if apply_w else 0)
           + 2 * _buf_bytes(tm, 1, jnp.float32)
           + 2 * _buf_bytes(1, dp, jnp.float32)
           + 2 * _buf_bytes(tm, dp, jnp.float32)
           + (_buf_bytes(tm, fd, jnp.float32) if nk > 1 else 0))
    vmem_limit = int(max(est + (4 << 20), 32 << 20))

    feat_read = (ns_pad * fd * cdb if x_resident
                 else nt_tiles * ns_pad * fd * cdb)
    cost = pl.CostEstimate(
        flops=2 * nt_pad * ns_pad * fd
              + (2 * nt_pad * source_dim * dp if apply_w else 0),
        transcendentals=0,
        bytes_accessed=(nt_pad * ns_pad * adb + feat_read
                        + (source_dim * dp * 4 if apply_w else 0)
                        + nt_pad * dp * 4 + nt_pad * 4 + dp * 4))

    kernel = _make_agg_kernel(num_k=nk, tk=tk, x_resident=x_resident,
                              apply_w=apply_w, mm_dtype=cd)

    out = pl.pallas_call(
        kernel,
        out_shape=jax.ShapeDtypeStruct((nt_pad, dp), jnp.float32),
        grid_spec=pltpu.PrefetchScalarGridSpec(
            num_scalar_prefetch=0,
            grid=(nt_tiles, nk),
            in_specs=in_specs,
            out_specs=pl.BlockSpec((tm, dp), lambda i, k: (i, 0)),
            scratch_shapes=scratch),
        compiler_params=pltpu.CompilerParams(
            dimension_semantics=("parallel", "arbitrary"),
            vmem_limit_bytes=vmem_limit),
        cost_estimate=cost,
    )(*inputs)

    h = out[:n_target, :target_dim]
    # Graph-independent elementwise tail kept in the wrapper so the kernel's
    # output stays lane-dense (multiple of 128).
    return jnp.concatenate([h, jnp.abs(target_feat.astype(jnp.float32))],
                           axis=1)


def reference_forward(x, inter_edge_index, weight, bias, target_feat, n_target):
    """Plain-JAX reference mirroring the PyTorch (PyG) code path exactly."""
    n_source = x.shape[0]
    N = n_source + n_target
    xw_full = jnp.concatenate(
        [x @ weight, jnp.zeros((n_target, weight.shape[1]), x.dtype)], axis=0)
    row = jnp.concatenate([inter_edge_index[0], jnp.arange(N)])
    col = jnp.concatenate([inter_edge_index[1] + n_source, jnp.arange(N)])
    ew = jnp.ones(row.shape[0], jnp.float32)
    deg = jnp.zeros(N, jnp.float32).at[col].add(ew)
    dis = jnp.where(deg > 0, deg ** -0.5, 0.0)
    norm = dis[row] * ew * dis[col]
    msg = norm[:, None] * xw_full[row]
    agg = jnp.zeros((N, weight.shape[1]), jnp.float32).at[col].add(msg)
    out = (agg + bias)[n_source:]
    out = jnp.maximum(out, 0.0)
    return jnp.concatenate([out, jnp.abs(target_feat)], axis=1)


if __name__ == "__main__":
    def _make_inputs(key, n_source, source_dim, target_dim, n_target,
                     target_feat_dim, n_edges):
        k_x, k_w, k_tf, k_src, k_tgt = jax.random.split(key, 5)
        x = jax.random.normal(k_x, (n_source, source_dim), jnp.float32)
        stdv = (6.0 / (source_dim + target_dim)) ** 0.5  # reset_parameters()
        weight = jax.random.uniform(k_w, (source_dim, target_dim), jnp.float32,
                                    minval=-stdv, maxval=stdv)
        bias = jnp.zeros((target_dim,), jnp.float32)      # bias.data.fill_(0)
        target_feat = jax.random.normal(k_tf, (n_target, target_feat_dim),
                                        jnp.float32)       # .normal_()
        src = jax.random.randint(k_src, (n_edges,), 0, n_source, jnp.int32)
        tgt = jax.random.randint(k_tgt, (n_edges,), 0, n_target, jnp.int32)
        return x, jnp.stack([src, tgt], axis=0), weight, bias, target_feat

    key = jax.random.PRNGKey(0)
    k1, k2, k3 = jax.random.split(key, 3)

    # Config 1: source_dim < padded target_dim -> fused (adj @ x) @ W path.
    a1 = _make_inputs(k1, 16, 8, 16, 8, 32, 24)
    ref1 = reference_forward(*a1, 8)
    out1 = jax.block_until_ready(
        inter_graph_forward(*a1, 8, compute_dtype=jnp.float32))
    assert out1.shape == (8, 16 + 32)
    assert bool(jnp.allclose(out1, ref1, atol=1e-4, rtol=1e-4)), "cfg1 f32"
    out1b = jax.block_until_ready(
        inter_graph_forward(*a1, 8, compute_dtype=jnp.bfloat16))
    assert bool(jnp.allclose(out1b, ref1, atol=1e-1, rtol=1e-1)), "cfg1 bf16"

    # Config 2: source_dim >= padded target_dim -> x@W precomputed (tiled
    # _xw_kernel) then streamed into the aggregation kernel.
    a2 = _make_inputs(k2, 40, 160, 24, 12, 16, 64)
    ref2 = reference_forward(*a2, 12)
    out2 = jax.block_until_ready(
        inter_graph_forward(*a2, 12, compute_dtype=jnp.float32))
    assert out2.shape == (12, 24 + 16)
    assert bool(jnp.allclose(out2, ref2, atol=1e-4, rtol=1e-4)), "cfg2 f32"

    # Config 3: n_source large enough for >1 reduction tile (accumulator path
    # + in-kernel pl.ds slicing of the VMEM-resident feature operand).
    a3 = _make_inputs(k3, 4200, 8, 16, 20, 32, 512)
    ref3 = reference_forward(*a3, 20)
    out3 = jax.block_until_ready(
        inter_graph_forward(*a3, 20, compute_dtype=jnp.float32))
    assert bool(jnp.allclose(out3, ref3, atol=1e-4, rtol=1e-4)), "cfg3 f32"
    # Same shapes, but force the streamed (non-resident) feature path.
    out3s = jax.block_until_ready(
        inter_graph_forward(*a3, 20, compute_dtype=jnp.float32,
                            feat_resident_max_bytes=0))
    assert bool(jnp.allclose(out3s, ref3, atol=1e-4, rtol=1e-4)), "cfg3 stream"

    print("KERNEL_OK")
</pallas_src>

<mosaic_0001>
module attributes {stable_mosaic.version = 11 : i64} {
  func.func @kernel(%arg0: i32, %arg1: i32, %arg2: memref<32x128xi8, #tpu.memory_space<vmem>>, %arg3: memref<128x8xf32, #tpu.memory_space<vmem>>, %arg4: memref<8x128xf32, #tpu.memory_space<vmem>>, %arg5: memref<32x1xf32, #tpu.memory_space<vmem>>, %arg6: memref<1x128xf32, #tpu.memory_space<vmem>>, %arg7: memref<32x128xf32, #tpu.memory_space<vmem>>) attributes {dimension_semantics = [#tpu.dimension_semantics<parallel>, #tpu.dimension_semantics<arbitrary>], iteration_bounds = array<i64: 1, 1>, scalar_prefetch = 0 : i64, scratch_operands = 0 : i64, tpu.core_type = #tpu.core_type<tc>, window_params = [{transform_indices = @transform_0, window_bounds = array<i64: 32, 128>}, {pipeline_mode = #tpu.pipeline_mode<synchronous>, transform_indices = @transform_1, window_bounds = array<i64: 128, 8>}, {pipeline_mode = #tpu.pipeline_mode<synchronous>, transform_indices = @transform_2, window_bounds = array<i64: 8, 128>}, {transform_indices = @transform_3, window_bounds = array<i64: 32, 1>}, {pipeline_mode = #tpu.pipeline_mode<synchronous>, transform_indices = @transform_4, window_bounds = array<i64: 1, 128>}, {transform_indices = @transform_5, window_bounds = array<i64: 32, 128>}]} {
    %c0 = arith.constant 0 : index
    %c0_0 = arith.constant 0 : index
    %0 = vector.load %arg3[%c0, %c0_0] : memref<128x8xf32, #tpu.memory_space<vmem>>, vector<128x8xf32>
    %c0_1 = arith.constant 0 : index
    %c0_2 = arith.constant 0 : index
    %1 = vector.load %arg2[%c0_1, %c0_2] : memref<32x128xi8, #tpu.memory_space<vmem>>, vector<32x128xi8>
    %2 = arith.sitofp %1 : vector<32x128xi8> to vector<32x128xf32>
    %cst = arith.constant dense<0.000000e+00> : vector<32x8xf32>
    %3 = tpu.matmul %2, %0, %cst {dimension_numbers = #tpu.dot_dimension_numbers<[1], [0], [0], [1], [0, 0, 1, 1], [], []>} : vector<32x128xf32>, vector<128x8xf32>, vector<32x8xf32> -> vector<32x8xf32>
    %c0_3 = arith.constant 0 : index
    %c0_4 = arith.constant 0 : index
    %4 = vector.load %arg4[%c0_3, %c0_4] : memref<8x128xf32, #tpu.memory_space<vmem>>, vector<8x128xf32>
    %cst_5 = arith.constant dense<0.000000e+00> : vector<32x128xf32>
    %5 = tpu.matmul %3, %4, %cst_5 {dimension_numbers = #tpu.dot_dimension_numbers<[1], [0], [0], [1], [0, 0, 1, 1], [], []>} : vector<32x8xf32>, vector<8x128xf32>, vector<32x128xf32> -> vector<32x128xf32>
    %c0_6 = arith.constant 0 : index
    %c0_7 = arith.constant 0 : index
    %6 = vector.load %arg5[%c0_6, %c0_7] : memref<32x1xf32, #tpu.memory_space<vmem>>, vector<32x1xf32>
    %7 = vector.broadcast %6 : vector<32x1xf32> to vector<32x128xf32>
    %8 = arith.mulf %5, %7 : vector<32x128xf32>
    %c0_8 = arith.constant 0 : index
    %c0_9 = arith.constant 0 : index
    %9 = vector.load %arg6[%c0_8, %c0_9] : memref<1x128xf32, #tpu.memory_space<vmem>>, vector<1x128xf32>
    %10 = vector.broadcast %9 : vector<1x128xf32> to vector<32x128xf32>
    %11 = arith.addf %8, %10 : vector<32x128xf32>
    %cst_10 = arith.constant 0.000000e+00 : f32
    %12 = vector.broadcast %cst_10 : f32 to vector<32x128xf32>
    %13 = arith.maximumf %11, %12 : vector<32x128xf32>
    %c0_11 = arith.constant 0 : index
    %c0_12 = arith.constant 0 : index
    %14 = vector.load %arg7[%c0_11, %c0_12] : memref<32x128xf32, #tpu.memory_space<vmem>>, vector<32x128xf32>
    tpu.vector_store %arg7[%c0_11, %c0_12], %13 {strides = array<i32>} : memref<32x128xf32, #tpu.memory_space<vmem>>, vector<32x128xf32>,
    return
  }
  func.func @transform_0(%arg0: i32, %arg1: i32) -> (i32, i32) {
    %c0_i32 = arith.constant 0 : i32
    return %arg0, %arg1 : i32, i32
  }
  func.func @transform_1(%arg0: i32, %arg1: i32) -> (i32, i32) {
    %c0_i32 = arith.constant 0 : i32
    %c0_i32_0 = arith.constant 0 : i32
    %c0_i32_1 = arith.constant 0 : i32
    return %c0_i32, %c0_i32_0 : i32, i32
  }
  func.func @transform_2(%arg0: i32, %arg1: i32) -> (i32, i32) {
    %c0_i32 = arith.constant 0 : i32
    %c0_i32_0 = arith.constant 0 : i32
    %c0_i32_1 = arith.constant 0 : i32
    return %c0_i32, %c0_i32_0 : i32, i32
  }
  func.func @transform_3(%arg0: i32, %arg1: i32) -> (i32, i32) {
    %c0_i32 = arith.constant 0 : i32
    %c0_i32_0 = arith.constant 0 : i32
    return %arg0, %c0_i32 : i32, i32
  }
  func.func @transform_4(%arg0: i32, %arg1: i32) -> (i32, i32) {
    %c0_i32 = arith.constant 0 : i32
    %c0_i32_0 = arith.constant 0 : i32
    %c0_i32_1 = arith.constant 0 : i32
    return %c0_i32, %c0_i32_0 : i32, i32
  }
  func.func @transform_5(%arg0: i32, %arg1: i32) -> (i32, i32) {
    %c0_i32 = arith.constant 0 : i32
    %c0_i32_0 = arith.constant 0 : i32
    return %arg0, %c0_i32 : i32, i32
  }
}

</mosaic_0001>

<bundles_post_ra>
// kernel: tpu_custom_call.1
= control target key start
LH: loop header
LB: loop body
LE: loop exit
PB: predicated region body
PF: predicated region fallthrough
CT: control target
= control target key end

     0   :  { %s503_s0 = inlined_call_operand.vmem [shape: s8[32,128], index: 0, kind: input, shape index: {}]   ;;  %s504_s1 = inlined_call_operand.vmem [shape: f32[128,8], index: 1, kind: input, shape index: {}]   ;;  %s505_s2 = inlined_call_operand.vmem [shape: f32[8,128], index: 2, kind: input, shape index: {}]   ;;  %s506_s3 = inlined_call_operand.vmem [shape: f32[32,1], index: 3, kind: input, shape index: {}]   ;;  %s507_s4 = inlined_call_operand.vmem [shape: f32[1,128], index: 4, kind: input, shape index: {}]   ;;  %s508_s5 = inlined_call_operand.hbm [shape: f32[32,128], index: 5, kind: output, shape index: {}]  }
   0x1   :  { %v36_v0 = vld [vmem:[%s504_s1 + $0x78] sm:$0xff]  ;;  %v35_v1 = vld [vmem:[%s504_s1 + $0x70] sm:$0xff]  ;;  %v34_v2 = vld [vmem:[%s504_s1 + $0x68] sm:$0xff] }
   0x2   :  { %323 = vmatprep.subr.mxu0 %v36_v0  ;;  %v33_v3 = vld [vmem:[%s504_s1 + $0x60] sm:$0xff] }
   0x3   :  { %324 = vmatpush3.msra.mxu0 %v36_v0  ;;  %v37_v4 = vld [vmem:[%s503_s0] sm:$0xff] }
   0x4   :  { %325 = vmatprep.subr.mxu0 %v35_v1 }
   0x5   :  { %326 = vmatpush3.msra.mxu0 %v35_v1 }
   0x6   :  { %327 = vmatprep.subr.mxu0 %v34_v2 }
   0x7   :  { %10 = vsyncpa [#allocation3], 0  ;;  %328 = vmatpush3.msra.mxu0 %v34_v2  ;;  %v32_v5 = vld [vmem:[%s504_s1 + $0x58] sm:$0xff]  ;;  %v38_v6 = vunpack.c.0.s8 %v37_v4  ;;  %v31_v7 = vld [vmem:[%s504_s1 + $0x50] sm:$0xff]  ;;  %v39_v17 = vunpack.c.1.s8 %v37_v4  ;;  %v40_v19 = vunpack.c.2.s8 %v37_v4  ;;  %v41_v22 = vunpack.c.3.s8 %v37_v4 }
   0x8   :  { %329 = vmatprep.subr.mxu0 %v33_v3  ;;  %v30_v9 = vld [vmem:[%s504_s1 + $0x48] sm:$0xff]  ;;  %v29_v10 = vld [vmem:[%s504_s1 + $0x40] sm:$0xff]  ;;  %v28_v11 = vld [vmem:[%s504_s1 + $0x38] sm:$0xff]  ;;  %v397_v28 = vmov 0   ;;  %vm132_vm0 = vcmask 64512  }
   0x9   :  { %330 = vmatpush3.msra.mxu0 %v33_v3  ;;  %v42_v8 = vcvt.s32.f32 %v38_v6  ;;  %v27_v12 = vld [vmem:[%s504_s1 + $0x30] sm:$0xff]  ;;  %v26_v13 = vld [vmem:[%s504_s1 + $0x28] sm:$0xff]  ;;  %v25_v14 = vld [vmem:[%s504_s1 + $0x20] sm:$0xff]  ;;  %v43_v21 = vcvt.s32.f32 %v39_v17  ;;  %v44_v23 = vcvt.s32.f32 %v40_v19  ;;  %v45_v24 = vcvt.s32.f32 %v41_v22  ;;  %373 = vset.pattern.permute.xlu0 %v397_v28 }
   0xa   :  { %331 = vmatprep.subr.mxu0 %v32_v5  ;;  %v24_v15 = vld [vmem:[%s504_s1 + $0x18] sm:$0xff]  ;;  %v23_v16 = vld [vmem:[%s504_s1 + $0x10] sm:$0xff]  ;;  %v22_v18 = vld [vmem:[%s504_s1 + $0x8] sm:$0xff]  ;;  %374 = vset.pattern.permute.xlu1 %v397_v28 }
   0xb   :  { %332 = vmatpush3.msra.mxu0 %v32_v5  ;;  %355 = vmatprep.mubr.f32.mxu0 %v42_v8  ;;  %v21_v20 = vld [vmem:[%s504_s1] sm:$0xff]  ;;  %v232_v27 = vld [vmem:[%s506_s3 + $0x10] sm:$0xff]  ;;  %v231_v29 = vld [vmem:[%s506_s3 + $0x8] sm:$0xff] }
   0xc   :  { %333 = vmatprep.subr.mxu0 %v31_v7  ;;  %v131_v25 = vld [vmem:[%s505_s2] sm:$0xff]  ;;  %246 = vperm.xlu1 %374, %v232_v27   ;;  %v233_v30 = vld [vmem:[%s506_s3 + $0x18] sm:$0xff] }
   0xd   :  { %334 = vmatpush3.msra.mxu0 %v31_v7  ;;  %361 = vmatprep.subr.mxu1 %v131_v25  ;;  %v230_v26 = vld [vmem:[%s506_s3] sm:$0xff]  ;;  %s398_s3 = smov [#allocation2]  }
   0xe   :  { %335 = vmatprep.subr.mxu0 %v30_v9  ;;  %362 = vmatpush3.msra.mxu1 %v131_v25  ;;  %v297_v39 = vld [vmem:[%s507_s4] ss:$0 sm:$0xff]  ;;  %s282_s10 = sshll.u32 %s398_s3, 4  ;;  %s283_s10 = int_to_ptr.vmem [resolvable:$true] %s282_s10 }
   0xf   :  { %336 = vmatpush3.msra.mxu0 %v30_v9  ;;  %236 = vperm.xlu0 %373, %v230_v26   ;;  %s375_s4 = scalar_lea.vmem %s283_s10, 512  ;;  %p380_p1 = scmp.lt.s32.totalorder %s283_s10, %s283_s10 }
  0x10   :  { %337 = vmatprep.subr.mxu0 %v29_v10  ;;  %251 = vperm.xlu1 %374, %v233_v30   ;;  %p376_p0 = scmp.ne.s32.totalorder %s283_s10, %s375_s4  ;;  %p381_p2 = scmp.lt.s32.totalorder %s375_s4, %s375_s4 }
  0x11   :  { %338 = vmatpush3.msra.mxu0 %v29_v10 }
  0x12   :  { %339 = vmatprep.subr.mxu0 %v28_v11  ;;  %p382_p3 = por %p381_p2, %p380_p1 }
  0x13   :  { %340 = vmatpush3.msra.mxu0 %v28_v11  ;;  %241 = vperm.xlu0 %373, %v231_v29  }
  0x14   :  { %341 = vmatprep.subr.mxu0 %v27_v12  ;;  %p383_p4 = pnand %p382_p3, %p376_p0 }
  0x15   :  { %342 = vmatpush3.msra.mxu0 %v27_v12 }
  0x16   :  { %343 = vmatprep.subr.mxu0 %v26_v13 }
  0x17   :  { %344 = vmatpush3.msra.mxu0 %v26_v13 }
  0x18   :  { %345 = vmatprep.subr.mxu0 %v25_v14 }
  0x19   :  { %346 = vmatpush3.msra.mxu0 %v25_v14 }
  0x1a   :  { %347 = vmatprep.subr.mxu0 %v24_v15 }
  0x1b   :  { %348 = vmatpush3.msra.mxu0 %v24_v15 }
  0x1c   :  { %349 = vmatprep.subr.mxu0 %v23_v16 }
  0x1d   :  { %350 = vmatpush3.msra.mxu0 %v23_v16 }
  0x1e   :  { %351 = vmatprep.subr.mxu0 %v22_v18 }
  0x1f   :  { %352 = vmatpush3.msra.mxu0 %v22_v18 }
  0x20   :  { %353 = vmatprep.subr.mxu0 %v21_v20 }
  0x21   :  { %354 = vmatpush3.msra.mxu0 %v21_v20 }
  0x22   :  { %356 = vmatmul.mubr.f32.vlgmr.msra.gmra.mxu0 %v43_v21 }
  0x23   :  { %358 = vmatprep.mubr.f32.mxu0 %v44_v23 }
  0x26   :  { %359 = vmatmul.mubr.f32.gmra.mxu0 %v45_v24 }
  0x87   :  { %v247_v36 = vpop.permute.xlu1 %246 }
  0x8a   :  { %v237_v35 = vpop.permute.xlu0 %236 }
  0x8b   :  { %v252_v44 = vpop.permute.xlu1 %251 }
  0x8e   :  { %v242_v37 = vpop.permute.xlu0 %241 }
  0xe2   :  { %v357_v31 = vpop.f32.mrf.mxu0 }
  0xe4   :  { %v112_v32 = vpop.f32.mrf.mxu0 }
  0xe5   :  { %363 = vmatprep.mubr.msk.f32.mxu1 %vm132_vm0, %v112_v32 }
  0xe6   :  { %v360_v33 = vpop.f32.mrf.mxu0  ;;  %364 = vmatmul.mubr.msk.f32.vlgmr.msra.gmra.mxu1 %vm132_vm0, %v357_v31 }
  0xe8   :  { %v122_v34 = vpop.f32.mrf.mxu0 }
  0xe9   :  { %366 = vmatprep.mubr.msk.f32.mxu1 %vm132_vm0, %v122_v34 }
  0xea   :  { %367 = vmatmul.mubr.msk.f32.gmra.mxu1 %vm132_vm0, %v360_v33 }
 0x1a6   :  { %v365_v38 = vpop.f32.mrf.mxu1 }
 0x1a7   :  { %v255_v40 = vmul.f32 %v365_v38, %v242_v37 }
 0x1a8   :  { %v211_v41 = vpop.f32.mrf.mxu1 }
 0x1a9   :  { %v266_v42 = vadd.f32 %v297_v39, %v255_v40  ;;  %v254_v43 = vmul.f32 %v237_v35, %v211_v41 }
 0x1aa   :  { %v368_v45 = vpop.f32.mrf.mxu1 }
 0x1ab   :  { %v270_v46 = vmax.f32 %v266_v42, 0.0  ;;  %v265_v47 = vadd.f32 %v297_v39, %v254_v43  ;;  %v257_v48 = vmul.f32 %v368_v45, %v252_v44 }
 0x1ac   :  { %v221_v49 = vpop.f32.mrf.mxu1 }
 0x1ad   :  { %274 = vst [vmem:[#allocation2 + $0x8] sm:$0xff] %v270_v46  ;;  %v269_v50 = vmax.f32 %v265_v47, 0.0  ;;  %v268_v51 = vadd.f32 %v297_v39, %v257_v48  ;;  %v256_v52 = vmul.f32 %v247_v36, %v221_v49 }
 0x1af   :  { %273 = vst [vmem:[#allocation2] sm:$0xff] %v269_v50  ;;  %v272_v53 = vmax.f32 %v268_v51, 0.0  ;;  %v267_v54 = vadd.f32 %v297_v39, %v256_v52 }
 0x1b1   :  { %276 = vst [vmem:[#allocation2 + $0x18] sm:$0xff] %v272_v53  ;;  %v271_v55 = vmax.f32 %v267_v54, 0.0 }
 0x1b3   :  { %275 = vst [vmem:[#allocation2 + $0x10] sm:$0xff] %v271_v55 }
 0x1b4   :  { %386 = shalt.err (!%p383_p4)
}
 0x1b5   :  { %s399_s11 = smov 128   ;;  %s400_s12 = smov 8  }
 0x1b6   :  { %288 = dma.vmem_to_hbm [thread:$0]  %s283_s10, 512, %s508_s5, [#allocation3], %s399_s11, %s399_s11, %s400_s12  }
 0x1b7   :  { %395 = dma.done.wait [#allocation3], 512  }
 0x1b8   :  { %396 = vsyncadd [#allocation3], 4294966784 }
 0x1b9   :  { %292 = vsyncpa [#allocation3], 1 }

</bundles_post_ra>
